<compile_context>
chip_gen: v7x
topology: tpu7x:2x2x1
jax: 0.10.0
libtpu: 0.0.40
codegen_flags: <defaults>
</compile_context>

<pallas_src>
import functools

import jax
import jax.numpy as jnp
from jax import lax
from jax.experimental import pallas as pl
from jax.experimental.pallas import tpu as pltpu

EPS = 1e-5  # PyTorch BatchNorm1d default eps


# ----------------------------------------------------------------------------
# Pallas kernel: one TemporalBlock (eval mode) per grid step (one batch elem),
# optionally fused with adaptive_avg_pool1d + all Linear heads (last block).
# ----------------------------------------------------------------------------
def _tblock_kernel(*refs, K, d, p, L, L1, L2, cout, has_ds, fuse_head):
    """Ref order: xp, w1c, w2c, scales, [wd], [wh, bh], out, y1p_scratch.

    xp_ref : (1, L+2p, Cin)   zero-padded input (residual sliced from it)
    w1c    : (Cin,  K*Cout)   conv1 taps concatenated along output columns
    w2c    : (Cout, K*Cout)   conv2 taps concatenated along output columns
    sc     : (4|5,  Cout)     rows = [s1, t1, s2, t2, (bd)]  (folded BN + bias)
    wd     : (Cin,  Cout)     1x1 downsample weight (only if has_ds)
    wh, bh : (Cout, H*O), (1, H*O)   fused pool+head weights (only if fuse_head)
    out    : (1, L2, Cout)  features   OR   (1, 1, H*O)  head outputs
    y1p    : (L1+2p, Cout) f32 scratch holding the re-padded conv1 activation
    """
    it = iter(refs)
    xp_ref = next(it)
    w1_ref = next(it)
    w2_ref = next(it)
    sc_ref = next(it)
    wd_ref = next(it) if has_ds else None
    wh_ref = next(it) if fuse_head else None
    bh_ref = next(it) if fuse_head else None
    o_ref = next(it)
    y1p_ref = next(it)

    sc = sc_ref[...]                                   # (R, Cout) f32
    s1, t1, s2, t2 = sc[0:1], sc[1:2], sc[2:3], sc[3:4]

    x_pad = xp_ref[0].astype(jnp.float32)              # (L+2p, Cin)

    # ---- conv1: single MXU matmul; tap-sum = shifted column-block adds ----
    z1 = jnp.dot(x_pad, w1_ref[...], preferred_element_type=jnp.float32)
    acc1 = z1[0:L1, 0:cout]
    for k in range(1, K):
        acc1 = acc1 + z1[k * d:k * d + L1, k * cout:(k + 1) * cout]
    # BN1 (eval, folded) + ReLU   (Dropout = identity)
    y1 = jnp.maximum(acc1 * s1 + t1, 0.0)

    # Re-pad conv1 output for conv2: only the 2p halo rows are (re)zeroed.
    if p > 0:
        zero_halo = jnp.zeros((p, cout), jnp.float32)
        y1p_ref[0:p, :] = zero_halo
        y1p_ref[p + L1:, :] = zero_halo
    y1p_ref[p:p + L1, :] = y1

    # ---- conv2: same single-matmul scheme ----
    z2 = jnp.dot(y1p_ref[...], w2_ref[...], preferred_element_type=jnp.float32)
    acc2 = z2[0:L2, 0:cout]
    for k in range(1, K):
        acc2 = acc2 + z2[k * d:k * d + L2, k * cout:(k + 1) * cout]
    y2 = jnp.maximum(acc2 * s2 + t2, 0.0)

    # ---- residual path ----
    x_res = x_pad[p:p + L, :]                          # unpadded input rows
    if has_ds:
        res = jnp.dot(x_res, wd_ref[...],
                      preferred_element_type=jnp.float32) + sc[4:5]
    else:
        res = x_res                                    # exact identity add
    out = jnp.maximum(y2 + res, 0.0)                   # (L2, Cout)

    if fuse_head:
        # adaptive_avg_pool1d(.,1) + all H Linear heads as one lane-dense matmul
        pooled = jnp.mean(out, axis=0, keepdims=True)                  # (1, C)
        heads = jnp.dot(pooled, wh_ref[...],
                        preferred_element_type=jnp.float32) + bh_ref[...]
        o_ref[0] = heads.astype(o_ref.dtype)           # (1, H*O)
    else:
        o_ref[0] = out.astype(o_ref.dtype)


# ----------------------------------------------------------------------------
# Wrapper: BN folding, weight re-layout, padding, BlockSpecs
# ----------------------------------------------------------------------------
def _temporal_block(x, blk, *, kernel_size, dilation, padding, head=None):
    B, L, cin = x.shape
    K, d, p = kernel_size, dilation, padding
    L1 = L + 2 * p - d * (K - 1)
    L2 = L1 + 2 * p - d * (K - 1)
    if L1 <= 0 or L2 != L:
        raise ValueError(
            f"residual shape mismatch (the PyTorch reference also fails here): "
            f"L={L}, conv output={L2}")
    cout = blk['w1'].shape[0]
    has_ds = blk['wd'] is not None
    fuse_head = head is not None

    # fold conv bias + eval-mode BatchNorm into per-channel scale / shift
    s1 = blk['bn1_gamma'] / jnp.sqrt(blk['bn1_var'] + EPS)
    t1 = blk['bn1_beta'] + (blk['b1'] - blk['bn1_mean']) * s1
    s2 = blk['bn2_gamma'] / jnp.sqrt(blk['bn2_var'] + EPS)
    t2 = blk['bn2_beta'] + (blk['b2'] - blk['bn2_mean']) * s2

    # PyTorch Conv1d weight (Cout, Cin, K) -> tap-concatenated (Cin, K*Cout)
    # where column block k holds tap k.  Done in XLA, free at trace time.
    w1c = jnp.transpose(blk['w1'], (1, 2, 0)).reshape(cin, K * cout)
    w2c = jnp.transpose(blk['w2'], (1, 2, 0)).reshape(cout, K * cout)

    rows = [s1, t1, s2, t2]
    if has_ds:
        rows.append(blk['bd'])
    sc = jnp.stack(rows, axis=0).astype(jnp.float32)    # (4|5, Cout)

    xp = jnp.pad(x, ((0, 0), (p, p), (0, 0)))           # single DMA'd copy

    inputs = [xp, w1c, w2c, sc]
    in_specs = [
        pl.BlockSpec((1, L + 2 * p, cin), lambda b: (b, 0, 0)),
        pl.BlockSpec((cin, K * cout), lambda b: (0, 0)),
        pl.BlockSpec((cout, K * cout), lambda b: (0, 0)),
        pl.BlockSpec((sc.shape[0], cout), lambda b: (0, 0)),
    ]
    if has_ds:
        wd = jnp.transpose(blk['wd'][:, :, 0], (1, 0))  # (Cin, Cout)
        inputs.append(wd)
        in_specs.append(pl.BlockSpec((cin, cout), lambda b: (0, 0)))
    if fuse_head:
        w_out, b_out = head                             # (H, O, C), (H, O)
        H, O = b_out.shape
        wh = jnp.transpose(w_out, (2, 0, 1)).reshape(cout, H * O)
        bh = b_out.reshape(1, H * O)
        inputs += [wh, bh]
        in_specs += [pl.BlockSpec((cout, H * O), lambda b: (0, 0)),
                     pl.BlockSpec((1, H * O), lambda b: (0, 0))]
        out_shape = jax.ShapeDtypeStruct((B, 1, H * O), x.dtype)
        out_spec = pl.BlockSpec((1, 1, H * O), lambda b: (b, 0, 0))
    else:
        out_shape = jax.ShapeDtypeStruct((B, L2, cout), x.dtype)
        out_spec = pl.BlockSpec((1, L2, cout), lambda b: (b, 0, 0))

    kernel = functools.partial(
        _tblock_kernel, K=K, d=d, p=p, L=L, L1=L1, L2=L2, cout=cout,
        has_ds=has_ds, fuse_head=fuse_head)

    out = pl.pallas_call(
        kernel,
        out_shape=out_shape,
        grid_spec=pltpu.PrefetchScalarGridSpec(
            num_scalar_prefetch=0,
            grid=(B,),
            in_specs=in_specs,
            out_specs=out_spec,
            scratch_shapes=[pltpu.VMEM((L1 + 2 * p, cout), jnp.float32)],
        ),
        compiler_params=pltpu.CompilerParams(
            dimension_semantics=("parallel",)),   # dual-TC sharding on v7x
    )(*inputs)

    if fuse_head:
        H, O = head[1].shape
        return out.reshape(B, H, O)               # == torch.stack(outputs, 1)
    return out


def temporal_conv_net_forward(x, params, cfg):
    """x: (B, sequence_length, input_dim) -> (B, forecast_horizon, output_dim)"""
    K = cfg['kernel_size']
    p = (K - 1) // 2
    n = len(params['blocks'])
    h = x
    for i, blk in enumerate(params['blocks']):
        head = (params['w_out'], params['b_out']) if i == n - 1 else None
        h = _temporal_block(h, blk, kernel_size=K, dilation=2 ** i, padding=p,
                            head=head)
    return h


# ----------------------------------------------------------------------------
# Deterministic parameter init (mirrors the module's init_weights)
# ----------------------------------------------------------------------------
def init_params(key, cfg):
    K, Ci, Hd = cfg['kernel_size'], cfg['input_dim'], cfg['hidden_dim']
    blocks = []
    for i in range(cfg['num_levels']):
        cin = Ci if i == 0 else Hd
        ks = jax.random.split(jax.random.fold_in(key, i), 6)
        blk = dict(
            w1=0.01 * jax.random.normal(ks[0], (Hd, cin, K), jnp.float32),
            b1=jax.random.uniform(ks[1], (Hd,), jnp.float32, -0.1, 0.1),
            w2=0.01 * jax.random.normal(ks[2], (Hd, Hd, K), jnp.float32),
            b2=jax.random.uniform(ks[3], (Hd,), jnp.float32, -0.1, 0.1),
            bn1_gamma=jnp.ones((Hd,), jnp.float32), bn1_beta=jnp.zeros((Hd,), jnp.float32),
            bn1_mean=jnp.zeros((Hd,), jnp.float32), bn1_var=jnp.ones((Hd,), jnp.float32),
            bn2_gamma=jnp.ones((Hd,), jnp.float32), bn2_beta=jnp.zeros((Hd,), jnp.float32),
            bn2_mean=jnp.zeros((Hd,), jnp.float32), bn2_var=jnp.ones((Hd,), jnp.float32),
        )
        if cin != Hd:
            blk['wd'] = 0.01 * jax.random.normal(ks[4], (Hd, cin, 1), jnp.float32)
            blk['bd'] = jax.random.uniform(ks[5], (Hd,), jnp.float32, -0.1, 0.1)
        else:
            blk['wd'], blk['bd'] = None, None
        blocks.append(blk)
    kh = jax.random.fold_in(key, 12345)
    w_out = 0.01 * jax.random.normal(
        kh, (cfg['forecast_horizon'], cfg['output_dim'], Hd), jnp.float32)
    b_out = jnp.zeros((cfg['forecast_horizon'], cfg['output_dim']), jnp.float32)
    return dict(blocks=blocks, w_out=w_out, b_out=b_out)


# ----------------------------------------------------------------------------
# Pure-JAX (XLA) reference for correctness checking
# ----------------------------------------------------------------------------
def reference_forward(x, params, cfg):
    K = cfg['kernel_size']
    p = (K - 1) // 2
    h = jnp.transpose(x, (0, 2, 1))                   # (B, C, L), like PyTorch
    for i, blk in enumerate(params['blocks']):
        d = 2 ** i

        def conv(z, w, b, pad, dil):
            y = lax.conv_general_dilated(z, w, (1,), [(pad, pad)],
                                         rhs_dilation=(dil,),
                                         dimension_numbers=('NCH', 'OIH', 'NCH'))
            return y + b[None, :, None]

        def bn(z, g, be, m, v):
            return ((z - m[None, :, None]) / jnp.sqrt(v[None, :, None] + EPS)
                    * g[None, :, None] + be[None, :, None])

        y = jax.nn.relu(bn(conv(h, blk['w1'], blk['b1'], p, d),
                           blk['bn1_gamma'], blk['bn1_beta'], blk['bn1_mean'], blk['bn1_var']))
        y = jax.nn.relu(bn(conv(y, blk['w2'], blk['b2'], p, d),
                           blk['bn2_gamma'], blk['bn2_beta'], blk['bn2_mean'], blk['bn2_var']))
        res = h if blk['wd'] is None else conv(h, blk['wd'], blk['bd'], 0, 1)
        h = jax.nn.relu(y + res)
    feats = jnp.mean(h, axis=2)                       # adaptive_avg_pool1d(.,1)
    outs = [feats @ params['w_out'][j].T + params['b_out'][j]
            for j in range(cfg['forecast_horizon'])]
    return jnp.stack(outs, axis=1)


# ----------------------------------------------------------------------------
if __name__ == "__main__":
    key = jax.random.PRNGKey(0)

    def run_and_check(cfg, batch, seed_offset):
        kx, kp = jax.random.split(jax.random.fold_in(key, seed_offset))
        x = jax.random.normal(
            kx, (batch, cfg['sequence_length'], cfg['input_dim']), jnp.float32)
        params = init_params(kp, cfg)
        fwd = jax.jit(functools.partial(temporal_conv_net_forward, cfg=cfg))
        out = jax.block_until_ready(fwd(x, params))
        ref = reference_forward(x, params, cfg)
        assert out.shape == (batch, cfg['forecast_horizon'], cfg['output_dim']), out.shape
        assert jnp.allclose(out, ref, rtol=1e-4, atol=1e-5), (out, ref)

    # Primary config (kernel_size=3 => only num_levels=1 is shape-valid):
    # exercises downsample residual + fused pool/head path.
    run_and_check(dict(input_dim=4, hidden_dim=32, output_dim=3, num_levels=1,
                       kernel_size=3, sequence_length=16, forecast_horizon=4),
                  batch=2, seed_offset=0)
    # Secondary config: kernel_size=1, two levels -> exercises identity
    # residual and the non-fused (intermediate-block) output path.
    run_and_check(dict(input_dim=32, hidden_dim=32, output_dim=3, num_levels=2,
                       kernel_size=1, sequence_length=16, forecast_horizon=4),
                  batch=2, seed_offset=1)

    print("KERNEL_OK")
</pallas_src>

<mosaic_0001>
module attributes {stable_mosaic.version = 11 : i64} {
  func.func @_tblock_kernel(%arg0: i32, %arg1: memref<1x18x4xf32, #tpu.memory_space<vmem>>, %arg2: memref<4x96xf32, #tpu.memory_space<vmem>>, %arg3: memref<32x96xf32, #tpu.memory_space<vmem>>, %arg4: memref<5x32xf32, #tpu.memory_space<vmem>>, %arg5: memref<4x32xf32, #tpu.memory_space<vmem>>, %arg6: memref<32x12xf32, #tpu.memory_space<vmem>>, %arg7: memref<1x12xf32, #tpu.memory_space<vmem>>, %arg8: memref<1x1x12xf32, #tpu.memory_space<vmem>>, %arg9: memref<18x32xf32, #tpu.memory_space<vmem>>) attributes {dimension_semantics = [#tpu.dimension_semantics<parallel>], iteration_bounds = array<i64: 2>, scalar_prefetch = 0 : i64, scratch_operands = 1 : i64, tpu.core_type = #tpu.core_type<tc>, window_params = [{transform_indices = @transform_0, window_bounds = array<i64: 1, 18, 4>}, {pipeline_mode = #tpu.pipeline_mode<synchronous>, transform_indices = @transform_1, window_bounds = array<i64: 4, 96>}, {pipeline_mode = #tpu.pipeline_mode<synchronous>, transform_indices = @transform_2, window_bounds = array<i64: 32, 96>}, {pipeline_mode = #tpu.pipeline_mode<synchronous>, transform_indices = @transform_3, window_bounds = array<i64: 5, 32>}, {pipeline_mode = #tpu.pipeline_mode<synchronous>, transform_indices = @transform_4, window_bounds = array<i64: 4, 32>}, {pipeline_mode = #tpu.pipeline_mode<synchronous>, transform_indices = @transform_5, window_bounds = array<i64: 32, 12>}, {pipeline_mode = #tpu.pipeline_mode<synchronous>, transform_indices = @transform_6, window_bounds = array<i64: 1, 12>}, {transform_indices = @transform_7, window_bounds = array<i64: 1, 1, 12>}]} {
    %c0 = arith.constant 0 : index
    %c0_0 = arith.constant 0 : index
    %0 = vector.load %arg4[%c0, %c0_0] : memref<5x32xf32, #tpu.memory_space<vmem>>, vector<5x32xf32>
    %1 = vector.extract_strided_slice %0 {offsets = [0, 0], sizes = [1, 32], strides = [1, 1]} : vector<5x32xf32> to vector<1x32xf32>
    %2 = vector.extract_strided_slice %0 {offsets = [1, 0], sizes = [1, 32], strides = [1, 1]} : vector<5x32xf32> to vector<1x32xf32>
    %3 = vector.extract_strided_slice %0 {offsets = [2, 0], sizes = [1, 32], strides = [1, 1]} : vector<5x32xf32> to vector<1x32xf32>
    %4 = vector.extract_strided_slice %0 {offsets = [3, 0], sizes = [1, 32], strides = [1, 1]} : vector<5x32xf32> to vector<1x32xf32>
    %c0_1 = arith.constant 0 : index
    %c0_2 = arith.constant 0 : index
    %c0_3 = arith.constant 0 : index
    %5 = vector.load %arg1[%c0_1, %c0_2, %c0_3] : memref<1x18x4xf32, #tpu.memory_space<vmem>>, vector<1x18x4xf32>
    %6 = vector.shape_cast %5 : vector<1x18x4xf32> to vector<18x4xf32>
    %c0_4 = arith.constant 0 : index
    %c0_5 = arith.constant 0 : index
    %7 = vector.load %arg2[%c0_4, %c0_5] : memref<4x96xf32, #tpu.memory_space<vmem>>, vector<4x96xf32>
    %cst = arith.constant dense<0.000000e+00> : vector<18x96xf32>
    %8 = tpu.matmul %6, %7, %cst {dimension_numbers = #tpu.dot_dimension_numbers<[1], [0], [0], [1], [0, 0, 1, 1], [], []>} : vector<18x4xf32>, vector<4x96xf32>, vector<18x96xf32> -> vector<18x96xf32>
    %9 = vector.extract_strided_slice %8 {offsets = [0, 0], sizes = [16, 32], strides = [1, 1]} : vector<18x96xf32> to vector<16x32xf32>
    %10 = vector.extract_strided_slice %8 {offsets = [1, 32], sizes = [16, 32], strides = [1, 1]} : vector<18x96xf32> to vector<16x32xf32>
    %11 = arith.addf %9, %10 : vector<16x32xf32>
    %12 = vector.extract_strided_slice %8 {offsets = [2, 64], sizes = [16, 32], strides = [1, 1]} : vector<18x96xf32> to vector<16x32xf32>
    %13 = arith.addf %11, %12 : vector<16x32xf32>
    %14 = vector.broadcast %1 : vector<1x32xf32> to vector<16x32xf32>
    %15 = arith.mulf %13, %14 : vector<16x32xf32>
    %16 = vector.broadcast %2 : vector<1x32xf32> to vector<16x32xf32>
    %17 = arith.addf %15, %16 : vector<16x32xf32>
    %cst_6 = arith.constant 0.000000e+00 : f32
    %18 = vector.broadcast %cst_6 : f32 to vector<16x32xf32>
    %19 = arith.maximumf %17, %18 : vector<16x32xf32>
    %cst_7 = arith.constant 0.000000e+00 : f32
    %20 = vector.broadcast %cst_7 : f32 to vector<1x32xf32>
    %c0_8 = arith.constant 0 : index
    %c0_9 = arith.constant 0 : index
    %21 = vector.load %arg9[%c0_8, %c0_9] : memref<18x32xf32, #tpu.memory_space<vmem>>, vector<1x32xf32>
    tpu.vector_store %arg9[%c0_8, %c0_9], %20 {strides = array<i32>} : memref<18x32xf32, #tpu.memory_space<vmem>>, vector<1x32xf32>,
    %c17 = arith.constant 17 : index
    %c0_10 = arith.constant 0 : index
    %22 = vector.load %arg9[%c17, %c0_10] : memref<18x32xf32, #tpu.memory_space<vmem>>, vector<1x32xf32>
    tpu.vector_store %arg9[%c17, %c0_10], %20 {strides = array<i32>} : memref<18x32xf32, #tpu.memory_space<vmem>>, vector<1x32xf32>,
    %c1 = arith.constant 1 : index
    %c0_11 = arith.constant 0 : index
    %23 = vector.load %arg9[%c1, %c0_11] : memref<18x32xf32, #tpu.memory_space<vmem>>, vector<16x32xf32>
    tpu.vector_store %arg9[%c1, %c0_11], %19 {strides = array<i32>} : memref<18x32xf32, #tpu.memory_space<vmem>>, vector<16x32xf32>,
    %c0_12 = arith.constant 0 : index
    %c0_13 = arith.constant 0 : index
    %24 = vector.load %arg9[%c0_12, %c0_13] : memref<18x32xf32, #tpu.memory_space<vmem>>, vector<18x32xf32>
    %c0_14 = arith.constant 0 : index
    %c0_15 = arith.constant 0 : index
    %25 = vector.load %arg3[%c0_14, %c0_15] : memref<32x96xf32, #tpu.memory_space<vmem>>, vector<32x96xf32>
    %cst_16 = arith.constant dense<0.000000e+00> : vector<18x96xf32>
    %26 = tpu.matmul %24, %25, %cst_16 {dimension_numbers = #tpu.dot_dimension_numbers<[1], [0], [0], [1], [0, 0, 1, 1], [], []>} : vector<18x32xf32>, vector<32x96xf32>, vector<18x96xf32> -> vector<18x96xf32>
    %27 = vector.extract_strided_slice %26 {offsets = [0, 0], sizes = [16, 32], strides = [1, 1]} : vector<18x96xf32> to vector<16x32xf32>
    %28 = vector.extract_strided_slice %26 {offsets = [1, 32], sizes = [16, 32], strides = [1, 1]} : vector<18x96xf32> to vector<16x32xf32>
    %29 = arith.addf %27, %28 : vector<16x32xf32>
    %30 = vector.extract_strided_slice %26 {offsets = [2, 64], sizes = [16, 32], strides = [1, 1]} : vector<18x96xf32> to vector<16x32xf32>
    %31 = arith.addf %29, %30 : vector<16x32xf32>
    %32 = vector.broadcast %3 : vector<1x32xf32> to vector<16x32xf32>
    %33 = arith.mulf %31, %32 : vector<16x32xf32>
    %34 = vector.broadcast %4 : vector<1x32xf32> to vector<16x32xf32>
    %35 = arith.addf %33, %34 : vector<16x32xf32>
    %cst_17 = arith.constant 0.000000e+00 : f32
    %36 = vector.broadcast %cst_17 : f32 to vector<16x32xf32>
    %37 = arith.maximumf %35, %36 : vector<16x32xf32>
    %38 = vector.extract_strided_slice %6 {offsets = [1, 0], sizes = [16, 4], strides = [1, 1]} : vector<18x4xf32> to vector<16x4xf32>
    %c0_18 = arith.constant 0 : index
    %c0_19 = arith.constant 0 : index
    %39 = vector.load %arg5[%c0_18, %c0_19] : memref<4x32xf32, #tpu.memory_space<vmem>>, vector<4x32xf32>
    %cst_20 = arith.constant dense<0.000000e+00> : vector<16x32xf32>
    %40 = tpu.matmul %38, %39, %cst_20 {dimension_numbers = #tpu.dot_dimension_numbers<[1], [0], [0], [1], [0, 0, 1, 1], [], []>} : vector<16x4xf32>, vector<4x32xf32>, vector<16x32xf32> -> vector<16x32xf32>
    %41 = vector.extract_strided_slice %0 {offsets = [4, 0], sizes = [1, 32], strides = [1, 1]} : vector<5x32xf32> to vector<1x32xf32>
    %42 = vector.broadcast %41 : vector<1x32xf32> to vector<16x32xf32>
    %43 = arith.addf %40, %42 : vector<16x32xf32>
    %44 = arith.addf %37, %43 : vector<16x32xf32>
    %cst_21 = arith.constant 0.000000e+00 : f32
    %45 = vector.broadcast %cst_21 : f32 to vector<16x32xf32>
    %46 = arith.maximumf %44, %45 : vector<16x32xf32>
    %cst_22 = arith.constant dense<0.000000e+00> : vector<32xf32>
    %47 = vector.multi_reduction <add>, %46, %cst_22 [0] : vector<16x32xf32> to vector<32xf32>
    %48 = vector.shape_cast %47 : vector<32xf32> to vector<1x32xf32>
    %cst_23 = arith.constant 1.600000e+01 : f32
    %49 = vector.broadcast %cst_23 : f32 to vector<1x32xf32>
    %50 = arith.divf %48, %49 : vector<1x32xf32>
    %c0_24 = arith.constant 0 : index
    %c0_25 = arith.constant 0 : index
    %51 = vector.load %arg6[%c0_24, %c0_25] : memref<32x12xf32, #tpu.memory_space<vmem>>, vector<32x12xf32>
    %cst_26 = arith.constant dense<0.000000e+00> : vector<1x12xf32>
    %52 = tpu.matmul %50, %51, %cst_26 {dimension_numbers = #tpu.dot_dimension_numbers<[1], [0], [0], [1], [0, 0, 1, 1], [], []>} : vector<1x32xf32>, vector<32x12xf32>, vector<1x12xf32> -> vector<1x12xf32>
    %c0_27 = arith.constant 0 : index
    %c0_28 = arith.constant 0 : index
    %53 = vector.load %arg7[%c0_27, %c0_28] : memref<1x12xf32, #tpu.memory_space<vmem>>, vector<1x12xf32>
    %54 = arith.addf %52, %53 : vector<1x12xf32>
    %c0_29 = arith.constant 0 : index
    %c0_30 = arith.constant 0 : index
    %c0_31 = arith.constant 0 : index
    %55 = vector.load %arg8[%c0_29, %c0_30, %c0_31] : memref<1x1x12xf32, #tpu.memory_space<vmem>>, vector<1x1x12xf32>
    %56 = vector.shape_cast %55 : vector<1x1x12xf32> to vector<1x12xf32>
    %57 = vector.shape_cast %54 : vector<1x12xf32> to vector<1x1x12xf32>
    tpu.vector_store %arg8[%c0_29, %c0_30, %c0_31], %57 {strides = array<i32>} : memref<1x1x12xf32, #tpu.memory_space<vmem>>, vector<1x1x12xf32>,
    return
  }
  func.func @transform_0(%arg0: i32) -> (i32, i32, i32) {
    %c0_i32 = arith.constant 0 : i32
    %c0_i32_0 = arith.constant 0 : i32
    %c0_i32_1 = arith.constant 0 : i32
    return %arg0, %c0_i32, %c0_i32_0 : i32, i32, i32
  }
  func.func @transform_1(%arg0: i32) -> (i32, i32) {
    %c0_i32 = arith.constant 0 : i32
    %c0_i32_0 = arith.constant 0 : i32
    %c0_i32_1 = arith.constant 0 : i32
    return %c0_i32, %c0_i32_0 : i32, i32
  }
  func.func @transform_2(%arg0: i32) -> (i32, i32) {
    %c0_i32 = arith.constant 0 : i32
    %c0_i32_0 = arith.constant 0 : i32
    %c0_i32_1 = arith.constant 0 : i32
    return %c0_i32, %c0_i32_0 : i32, i32
  }
  func.func @transform_3(%arg0: i32) -> (i32, i32) {
    %c0_i32 = arith.constant 0 : i32
    %c0_i32_0 = arith.constant 0 : i32
    %c0_i32_1 = arith.constant 0 : i32
    return %c0_i32, %c0_i32_0 : i32, i32
  }
  func.func @transform_4(%arg0: i32) -> (i32, i32) {
    %c0_i32 = arith.constant 0 : i32
    %c0_i32_0 = arith.constant 0 : i32
    %c0_i32_1 = arith.constant 0 : i32
    return %c0_i32, %c0_i32_0 : i32, i32
  }
  func.func @transform_5(%arg0: i32) -> (i32, i32) {
    %c0_i32 = arith.constant 0 : i32
    %c0_i32_0 = arith.constant 0 : i32
    %c0_i32_1 = arith.constant 0 : i32
    return %c0_i32, %c0_i32_0 : i32, i32
  }
  func.func @transform_6(%arg0: i32) -> (i32, i32) {
    %c0_i32 = arith.constant 0 : i32
    %c0_i32_0 = arith.constant 0 : i32
    %c0_i32_1 = arith.constant 0 : i32
    return %c0_i32, %c0_i32_0 : i32, i32
  }
  func.func @transform_7(%arg0: i32) -> (i32, i32, i32) {
    %c0_i32 = arith.constant 0 : i32
    %c0_i32_0 = arith.constant 0 : i32
    %c0_i32_1 = arith.constant 0 : i32
    return %arg0, %c0_i32, %c0_i32_0 : i32, i32, i32
  }
}

</mosaic_0001>

<bundles_post_ra>
// kernel: temporal_conv_net_forward.1
= control target key start
LH: loop header
LB: loop body
LE: loop exit
PB: predicated region body
PF: predicated region fallthrough
CT: control target
= control target key end

     0   :  { %s963_s24 = smov 0   ;;  %s1091_s0 = inlined_call_operand.vmem [shape: f32[2,18,4], index: 0, kind: input, shape index: {}]   ;;  %s1092_s1 = inlined_call_operand.vmem [shape: f32[4,96], index: 1, kind: input, shape index: {}]   ;;  %s1093_s2 = inlined_call_operand.vmem [shape: f32[32,96], index: 2, kind: input, shape index: {}]   ;;  %s1094_s3 = inlined_call_operand.vmem [shape: f32[5,32], index: 3, kind: input, shape index: {}]   ;;  %s1095_s4 = inlined_call_operand.vmem [shape: f32[4,32], index: 4, kind: input, shape index: {}]   ;;  %s1096_s5 = inlined_call_operand.vmem [shape: f32[32,12], index: 5, kind: input, shape index: {}]   ;;  %s1097_s6 = inlined_call_operand.vmem [shape: f32[1,12], index: 6, kind: input, shape index: {}]   ;;  %s1098_s7 = inlined_call_operand.vmem [shape: f32[2,1,12], index: 7, kind: output, shape index: {}]  }
   0x1 LB: > { %s798_s25 = sadd.s32 4294967295, %s916_s24   ;;  %p802_p0 = scmp.ge.s32.totalorder %s916_s24, 1  ;;  %s916_s24 = sphi %s963_s24, %s17_s24  }
   0x2   : > { %p237_p1 = scmp.lt.s32.totalorder %s916_s24, 3 }
   0x4   : > { %p238_p2 = pnand %p802_p0, %p237_p1 }
   0x5   : > { %v279_v0 = vld [vmem:[%s1092_s1] sm:$0xf] (!%p238_p2)  ;;  %vm290_vm0 = vcmask (!%p238_p2), 1043456   ;;  %p267_p3 = scmp.lt.s32.totalorder (!%p238_p2), %s798_s25, 1  ;;  %v918_v1 = vmov (!%p238_p2), 0.0   ;;  %vm919_vm1 = vmmov (!%p238_p2), 0   ;;  %v405_v34 = vlaneseq (!%p238_p2) }
   0x6   : > { %241 = sbr.rel (%p238_p2) target bundleno = 956 (0x3bc), region = 48  ;;  %836 = vmatprep.subr.mxu0 (!%p238_p2), %v918_v1  ;;  %838 = vmatprep.mubr.msk.f32.mxu0 (!%p238_p2), %vm919_vm1, %v918_v1  ;;  %vm280_vm2 = vcmask (!%p238_p2), 31744   ;;  %vm391_vm3 = vcmask (!%p238_p2), 1045504   ;;  %v428_v7 = vld [vmem:[%s1093_s2] sm:$0xff] (!%p238_p2)  ;;  %v429_v8 = vld [vmem:[%s1093_s2 + $0x8] sm:$0xff] (!%p238_p2)  ;;  %vm377_vm4 = vcmask (!%p238_p2), 1046528  }
   0x7   : > { %837 = vmatpush3.msk.msra.mxu0 (!%p238_p2), %vm290_vm0, %v279_v0  ;;  %858 = vmatprep.mubr.msk.f32.mxu1 (!%p238_p2), %vm919_vm1, %v918_v1  ;;  %v881_v10 = vpack.c.bf16 (!%p238_p2), %v429_v8, %v428_v7  ;;  %vm419_vm5 = vcmask (!%p238_p2), 253952   ;;  %v920_v16 = vmov (!%p238_p2), 0.0|0.0   ;;  %v430_v19 = vld [vmem:[%s1093_s2 + $0x10] sm:$0xff] (!%p238_p2)  ;;  %v431_v20 = vld [vmem:[%s1093_s2 + $0x18] sm:$0xff] (!%p238_p2)  ;;  %s921_s17 = smov (!%p238_p2), 64   ;;  %s922_s18 = smov (!%p238_p2), 96  }
   0x8   : > { %880 = vmatprep.subr.bf16.mxu0 (!%p238_p2), %v920_v16  ;;  %892 = vmatprep.subr.bf16.mxu1 (!%p238_p2), %v920_v16  ;;  %420 = vst.msk [vmem:[#allocation2] sm:$0x1] (!%p238_p2), %vm419_vm5, %v918_v1  ;;  %421 = vst.msk [vmem:[#allocation2 + $0x11] sm:$0x1] (!%p238_p2), %vm419_vm5, %v918_v1  ;;  %v884_v22 = vpack.c.bf16 (!%p238_p2), %v431_v20, %v430_v19  ;;  %v564_v31 = vld [vmem:[%s1095_s4] sm:$0xf] (!%p238_p2) }
   0x9   : > { %894 = vmatpush3.bf16.msra.mxu1 (!%p238_p2), %v881_v10  ;;  %v1028_v35 = vshrl.u32 (!%p238_p2), %v405_v34, 7  ;;  %v1034_v37 = vld [vmem:[%s1094_s3] sm:$0x1f] (!%p238_p2)  ;;  %vm422_vm6 = vcmask (!%p238_p2), 261120   ;;  %vm749_vm7 = vcmask (!%p238_p2), 90112  }
   0xa   : > { %893 = vmatprep.subr.bf16.mxu1 (!%p238_p2), %v920_v16 }
   0xb   : > { %v407_v36 = vsub.s32 (!%p238_p2), 0, %v1028_v35  ;;  %v413_v38 = vsub.s32 (!%p238_p2), 1, %v1028_v35  ;;  %v552_v19 = vsub.s32 (!%p238_p2), 2, %v1028_v35 }
   0xd   : > { %s1100_s25 = smov (!%p267_p3, %s798_s25), 1  ;;  %895 = vmatpush3.bf16.msra.mxu1 %v884_v22  ;;  %v408_v41 = vrot.slane %v1034_v37, %v407_v36  ;;  %v414_v43 = vrot.slane %v1034_v37, %v413_v38 }
   0xe   : > { %s896_s28 = smul.u32 24, %s1100_s25  ;;  %886 = vmatprep.subr.bf16.mxu1 %v920_v16  ;;  %s274_s14 = scalar_lea.vmem %s1098_s7, %s1100_s25 }
  0x10   : > { %s271_s8 = scalar_lea.vmem %s1091_s0, %s896_s28 }
  0x11   : > { %v276_v2 = vld [vmem:[%s271_s8] sm:$0xff]  ;;  %v277_v3 = vld [vmem:[%s271_s8 + $0x8] sm:$0xff]  ;;  %v278_v4 = vld [vmem:[%s271_s8 + $0x10] sm:$0x3] }
  0x12   : > { %839 = vmatmul.mubr.msk.f32.vlgmr.msra.gmra.mrb[0].mxu0 %vm280_vm2, %v276_v2  ;;  %v569_v28 = vrot.slane %v276_v2, 1  ;;  %v570_v29 = vrot.slane %v277_v3, 1  ;;  %v572_v30 = vrot.slane %v278_v4, 1 }
  0x13   : > { %841 = vmatprep.mubr.msk.f32.mxu0 %vm919_vm1, %v918_v1  ;;  %882 = vmatpush3.bf16.msra.mxu0 %v881_v10 }
  0x14   : > { %883 = vmatprep.subr.bf16.mxu0 %v920_v16  ;;  %v571_v32 = vsel %vm377_vm4, %v569_v28, %v570_v29  ;;  %v573_v33 = vsel %vm377_vm4, %v570_v29, %v572_v30 }
  0x16   : > { %842 = vmatmul.mubr.msk.f32.gmra.mrb[2].mxu0 %vm280_vm2, %v277_v3 }
  0x17   : > { %844 = vmatprep.mubr.msk.f32.mxu0 %vm919_vm1, %v918_v1  ;;  %885 = vmatpush3.bf16.msra.mxu0 %v884_v22  ;;  %v567_v22 = vsub.s32 4, %v1028_v35 }
  0x18   : > { %864 = vmatprep.subr.msk.mxu0 %vm290_vm0, %v564_v31 }
  0x19   : > { %v568_v28 = vrot.slane %v1034_v37, %v567_v22 }
  0x1a   : > { %845 = vmatmul.mubr.msk.f32.gmra.mrb[4].mxu0 %vm280_vm2, %v278_v4 }
  0x1b   : > { %855 = vmatprep.mubr.msk.f32.mxu0 %vm919_vm1, %v918_v1 }
  0xe5   : > { %v360_v5 = vpop.f32.mrb[0].mxu0 }
  0xe6   : > { %v840_v6 = vpop.f32.mrb[1].mxu0  ;;  %v378_v11 = vrot.slane %v360_v5, 1  ;;  %v392_v12 = vrot.slane %v360_v5, 2 }
  0xe9   : > { %v365_v9 = vpop.f32.mrb[2].mxu0 }
  0xea   : > { %v379_v13 = vrot.slane %v365_v9, 1  ;;  %v393_v14 = vrot.slane %v365_v9, 2  ;;  %v843_v15 = vpop.f32.mrb[3].mxu0 }
  0xeb   : > { %v673_v15 = vld [vmem:[%s1096_s5 + $0x10] sm:$0xff] }
  0xec   : > { %v394_v17 = vsel %vm391_vm3, %v392_v12, %v393_v14  ;;  %v380_v18 = vsel %vm377_vm4, %v378_v11, %v379_v13  ;;  %v671_v12 = vld [vmem:[%s1096_s5] sm:$0xff] }
  0xed   : > { %397 = vrot.lane.b32.xlu1 %v394_v17, %s921_s17  ;;  %383 = vrot.lane.b32.xlu0 %v380_v18, %s922_s18  ;;  %v370_v21 = vpop.f32.mrb[4].mxu0  ;;  %v674_v17 = vld [vmem:[%s1096_s5 + $0x18] sm:$0xff] }
  0xee   : > { %v381_v23 = vrot.slane %v370_v21, 1  ;;  %v395_v24 = vrot.slane %v370_v21, 2  ;;  %v846_v25 = vpop.f32.mrb[5].mxu0  ;;  %v890_v18 = vpack.c.bf16 %v674_v17, %v673_v15  ;;  %v558_v21 = vsub.s32 3, %v1028_v35 }
  0xf0   : > { %v396_v26 = vsel %vm391_vm3, %v393_v14, %v395_v24  ;;  %v382_v27 = vsel %vm377_vm4, %v379_v13, %v381_v23  ;;  %v672_v13 = vld [vmem:[%s1096_s5 + $0x8] sm:$0xff] }
  0xf1   : > { %399 = vrot.lane.b32.xlu1 %v396_v26, %s921_s17  ;;  %385 = vrot.lane.b32.xlu0 %v382_v27, %s922_s18  ;;  %v887_v14 = vpack.c.bf16 %v672_v13, %v671_v12  ;;  %v559_v26 = vrot.slane %v1034_v37, %v558_v21 }
 0x15f   : > { %v398_v39 = vpop.permute.xlu1 %397  ;;  %v384_v40 = vpop.permute.xlu0 %383 }
 0x160   : > { %v389_v42 = vadd.f32 %v384_v40, %v360_v5 }
 0x162   : > { %v403_v44 = vadd.f32 %v398_v39, %v389_v42 }
 0x163   : > { %v386_v45 = vpop.permute.xlu0 %385  ;;  %v400_v48 = vpop.permute.xlu1 %399 }
 0x164   : > { %v409_v46 = vmul.f32 %v408_v41, %v403_v44  ;;  %v390_v47 = vadd.f32 %v386_v45, %v365_v9 }
 0x166   : > { %v415_v49 = vadd.f32 %v414_v43, %v409_v46  ;;  %v404_v50 = vadd.f32 %v400_v48, %v390_v47 }
 0x168   : > { %v417_v51 = vmax.f32 %v415_v49, 0.0  ;;  %v410_v52 = vmul.f32 %v408_v41, %v404_v50 }
 0x16a   : > { %423 = vst.msk [vmem:[#allocation2 + $0x1] sm:$0xff] %vm422_vm6, %v417_v51  ;;  %v416_v53 = vadd.f32 %v414_v43, %v410_v52 }
 0x16c   : > { %v418_v54 = vmax.f32 %v416_v53, 0.0 }
 0x16e   : > { %424 = vst.msk [vmem:[#allocation2 + $0x9] sm:$0xff] %vm422_vm6, %v418_v54  ;;  %v675_v54 = vld [vmem:[%s1097_s6] sm:$0x1] }
 0x171   : > { %v425_v55 = vld [vmem:[#allocation2] sm:$0xff] }
 0x172   : > { %856 = vmatmul.mubr.msk.f32.vlgmr.msra.gmra.mrb[6].mxu0 %vm422_vm6, %v425_v55 }
 0x173   : > { %865 = vmatpush3.msk.msra.mxu0 %vm290_vm0, %v564_v31  ;;  %866 = vmatprep.mubr.msk.f32.mxu0 %vm280_vm2, %v571_v32 }
 0x175   : > { %v426_v56 = vld [vmem:[#allocation2 + $0x8] sm:$0xff]  ;;  %v427_v57 = vld [vmem:[#allocation2 + $0x10] sm:$0x3] }
 0x176   : > { %859 = vmatmul.mubr.msk.f32.vlgmr.msra.gmra.mrb[0].mxu1 %vm422_vm6, %v426_v56  ;;  %867 = vmatmul.mubr.msk.f32.vlgmr.msra.gmra.mrb[8].mxu0 %vm280_vm2, %v573_v33 }
 0x177   : > { %861 = vmatprep.mubr.msk.f32.mxu1 %vm919_vm1, %v918_v1  ;;  %888 = vmatpush3.bf16.msra.mxu1 %v887_v14 }
 0x178   : > { %889 = vmatprep.subr.bf16.mxu1 %v920_v16  ;;  %v553_v16 = vrot.slane %v1034_v37, %v552_v19 }
 0x17a   : > { %862 = vmatmul.mubr.msk.f32.gmra.mrb[2].mxu1 %vm422_vm6, %v427_v57 }
 0x17b   : > { %877 = vmatprep.mubr.msk.f32.mxu1 %vm919_vm1, %v918_v1  ;;  %891 = vmatpush3.bf16.msra.mxu1 %v890_v18 }
 0x245   : > { %v507_v58 = vpop.f32.mrb[6].mxu0 }
 0x246   : > { %v857_v59 = vpop.f32.mrb[7].mxu0  ;;  %v524_v62 = vrot.slane %v507_v58, 1  ;;  %v537_v63 = vrot.slane %v507_v58, 2 }
 0x249   : > { %v512_v60 = vpop.f32.mrb[0].mxu1  ;;  %v868_v61 = vpop.f32.mrb[8].mxu0 }
 0x24a   : > { %v525_v0 = vrot.slane %v512_v60, 1  ;;  %v538_v2 = vrot.slane %v512_v60, 2  ;;  %v860_v3 = vpop.f32.mrb[1].mxu1  ;;  %v647_v4 = vpop.f32.mrb[9].mxu0  ;;  %v653_v35 = vadd.f32 %v868_v61, %v568_v28 }
 0x24b   : > { %v648_v34 = vadd.f32 %v647_v4, %v568_v28 }
 0x24c   : > { %v526_v5 = vsel %vm377_vm4, %v524_v62, %v525_v0  ;;  %v539_v6 = vsel %vm391_vm3, %v537_v63, %v538_v2 }
 0x24d   : > { %v517_v7 = vpop.f32.mrb[2].mxu1  ;;  %529 = vrot.lane.b32.xlu0 %v526_v5, %s922_s18 }
 0x24e   : > { %v527_v8 = vrot.slane %v517_v7, 1  ;;  %v540_v9 = vrot.slane %v517_v7, 2  ;;  %v863_v1 = vpop.f32.mrb[3].mxu1 }
 0x250   : > { %v528_v10 = vsel %vm377_vm4, %v525_v0, %v527_v8  ;;  %v541_v11 = vsel %vm391_vm3, %v538_v2, %v540_v9 }
 0x251   : > { %531 = vrot.lane.b32.xlu1 %v528_v10, %s922_s18  ;;  %542 = vrot.lane.b32.xlu0 %v539_v6, %s921_s17 }
 0x255   : > { %544 = vrot.lane.b32.xlu1 %v541_v11, %s921_s17 }
 0x2bf   : > { %v530_v20 = vpop.permute.xlu0 %529 }
 0x2c0   : > { %v535_v23 = vadd.f32 %v530_v20, %v507_v58 }
 0x2c3   : > { %v532_v24 = vpop.permute.xlu1 %531  ;;  %v543_v25 = vpop.permute.xlu0 %542 }
 0x2c4   : > { %v548_v27 = vadd.f32 %v543_v25, %v535_v23  ;;  %v536_v29 = vadd.f32 %v532_v24, %v512_v60 }
 0x2c6   : > { %v554_v30 = vmul.f32 %v553_v16, %v548_v27 }
 0x2c7   : > { %v545_v31 = vpop.permute.xlu1 %544 }
 0x2c8   : > { %v560_v32 = vadd.f32 %v559_v26, %v554_v30  ;;  %v549_v33 = vadd.f32 %v545_v31, %v536_v29 }
 0x2ca   : > { %v555_v36 = vmul.f32 %v553_v16, %v549_v33  ;;  %v562_v38 = vmax.f32 %v560_v32, 0.0 }
 0x2cc   : > { %v561_v39 = vadd.f32 %v559_v26, %v555_v36  ;;  %v656_v40 = vadd.f32 %v648_v34, %v562_v38 }
 0x2ce   : > { %v563_v41 = vmax.f32 %v561_v39, 0.0  ;;  %v658_v43 = vmax.f32 %v656_v40, 0.0 }
 0x2d0   : > { %v657_v42 = vadd.f32 %v653_v35, %v563_v41  ;;  %v660_v37 = vsel %vm422_vm6, %v658_v43, 0.0 }
 0x2d2   : > { %v659_v44 = vmax.f32 %v657_v42, 0.0 }
 0x2d4   : > { %v661_v45 = vsel %vm422_vm6, %v659_v44, 0.0 }
 0x2d5   : > { %v662_v46 = vadd.f32 %v661_v45, %v660_v37 }
 0x2d7   : > { %v663_v47 = vrot.slane %v662_v46, 4 }
 0x2d9   : > { %v664_v48 = vadd.f32 %v663_v47, %v662_v46 }
 0x2db   : > { %v665_v49 = vrot.slane %v664_v48, 2 }
 0x2dd   : > { %v666_v50 = vadd.f32 %v665_v49, %v664_v48 }
 0x2df   : > { %v667_v51 = vrot.slane %v666_v50, 1 }
 0x2e1   : > { %v668_v52 = vadd.f32 %v667_v51, %v666_v50 }
 0x2e3   : > { %v670_v53 = vmul.f32 0.0625, %v668_v52 }
 0x2e5   : > { %878 = vmatmul.mubr.msk.f32.vlgmr.msra.gmra.mrb[4].mxu1 %vm422_vm6, %v670_v53 }
 0x3b8   : > { %v745_v55 = vpop.f32.mrb[4].mxu1 }
 0x3b9   : > { %v746_v56 = vadd.f32 %v745_v55, %v675_v54  ;;  %v879_v57 = vpop.f32.mrb[5].mxu1 }
 0x3bb   : > { %750 = vst.msk [vmem:[%s274_s14] sm:$0x1] %vm749_vm7, %v746_v56 }
 0x3bc PF: > { %s17_s24 = sadd.s32 1, %s916_s24  }
 0x3bd   : > { %p14_p4 = scmp.ge.s32.totalorder %s17_s24, 4  }
 0x3bf   :  { %16 = sbr.rel (!%p14_p4) target bundleno = 1 (0x1), region = 78 }

</bundles_post_ra>
